<compile_context>
chip_gen: v7x
topology: tpu7x:2x2x1
jax: 0.10.0
libtpu: 0.0.40
codegen_flags: <defaults>
</compile_context>

<pallas_src>
import functools

import jax
import jax.numpy as jnp
from jax.experimental import pallas as pl
from jax.experimental.pallas import tpu as pltpu

_BN_EPS = 1e-5


# ----------------------------------------------------------------------------
# In-kernel helpers
# ----------------------------------------------------------------------------
def _dilated_multibranch_matmul(x, w_ref, offsets, pad, T, M):
    """All branches of one dilated conv as per-tap MXU accumulation.

    x:      (Bt, T, C) bf16 activations.
    w_ref:  (n_off, C, out_ch) bf16 fused tap weights (BN scale folded in,
            zero columns for taps a branch does not use).
    Returns (M, out_ch) f32 accumulator (M = Bt*T).
    """
    Bt, _, C = x.shape
    if pad > 0:
        z = jnp.zeros((Bt, pad, C), x.dtype)
        xp = jnp.concatenate([z, x, z], axis=1)        # (Bt, T + 2*pad, C) zero halo
    else:
        xp = x
    acc = None
    for t, off in enumerate(offsets):
        xt = xp[:, off:off + T, :].reshape(M, C)       # static slice, bf16
        d = jnp.dot(xt, w_ref[t], preferred_element_type=jnp.float32)
        acc = d if acc is None else acc + d
    return acc


def _mb_level_kernel(x_ref, w0_ref, s0_ref, w1_ref, s1_ref, *rest,
                     offsets, pad, has_ds):
    """One MultibranchTemporalBlock (cbcr0 -> cbcr1 -> residual -> ReLU)."""
    if has_ds:
        wds_ref, o_ref = rest
    else:
        (o_ref,) = rest

    Bt, T, Cin = x_ref.shape
    out_ch = o_ref.shape[-1]
    M = Bt * T

    x32 = x_ref[...]
    x = x32.astype(jnp.bfloat16)                       # bf16 BEFORE halo/taps

    # ---- cbcr0: every branch's dilated conv + folded BN/bias + ReLU ----------
    acc0 = _dilated_multibranch_matmul(x, w0_ref, offsets, pad, T, M)
    y0 = jnp.maximum(acc0 + s0_ref[...], 0.0)
    # TODO(synk): nn.Dropout is identity at inference; training dropout not modeled.

    # ---- cbcr1 branches on y0 (kept entirely on-chip, no HBM round trip) -----
    y0b = y0.astype(jnp.bfloat16).reshape(Bt, T, out_ch)
    acc1 = _dilated_multibranch_matmul(y0b, w1_ref, offsets, pad, T, M)

    # ---- residual: 1x1 downsample folded into the same accumulator -----------
    if has_ds:
        acc1 = acc1 + jnp.dot(x.reshape(M, Cin), wds_ref[...],
                              preferred_element_type=jnp.float32)
        # downsample bias is folded into s1 at init
    else:
        acc1 = acc1 + x32.reshape(M, Cin).astype(jnp.float32)

    out = jnp.maximum(acc1 + s1_ref[...], 0.0)
    o_ref[...] = out.reshape(Bt, T, out_ch).astype(o_ref.dtype)


# ----------------------------------------------------------------------------
# pallas_call wrapper (one call per TCN level)
# ----------------------------------------------------------------------------
def _choose_batch_tile(B, T, C):
    """Largest per-step batch tile that divides B, keeps an even block count
    >= 2 when possible (v7x has 2 TensorCores) and keeps the per-step slab small."""
    max_rows = max(1, (4 << 20) // max(1, T * C * 4))
    divisors = [d for d in range(1, B + 1) if B % d == 0 and d <= max_rows] or [1]
    even_ge2 = [d for d in divisors if (B // d) >= 2 and (B // d) % 2 == 0]
    if even_ge2:
        return max(even_ge2)
    ge2 = [d for d in divisors if (B // d) >= 2]
    if ge2:
        return max(ge2)
    return max(divisors)


def _vmem_limit_bytes(Bt, T, Cin, out_ch, n_off, pad):
    """Derive the scoped-VMEM limit from the real footprint; cap < v7x's 64 MiB."""
    bf16, f32 = 2, 4
    weights = ((n_off * Cin * out_ch + n_off * out_ch * out_ch + Cin * out_ch) * bf16
               + 2 * out_ch * f32)
    blocks = 2 * Bt * T * Cin * f32 + 2 * Bt * T * out_ch * bf16   # double-buffered I/O
    interm = (Bt * (T + 2 * pad) * (Cin + out_ch) * bf16           # halo'd x and y0
              + 4 * Bt * T * out_ch * f32)                         # accumulators etc.
    footprint = 2 * weights + blocks + interm
    return int(min(max(2 * footprint + (8 << 20), 16 << 20), 56 << 20))


def mb_level_forward(x_btc, p):
    """x_btc: (B, T, Cin) f32/bf16 -> (B, T, out_ch) bf16."""
    B, T, Cin = x_btc.shape
    out_ch = p['shift0'].shape[-1]
    has_ds = p['wds'] is not None
    Bt = _choose_batch_tile(B, T, max(Cin, out_ch))
    grid = (B // Bt,)

    kern = functools.partial(_mb_level_kernel, offsets=tuple(p['offsets']),
                             pad=p['pad'], has_ds=has_ds)

    arrays = [x_btc, p['w0'], p['shift0'], p['w1'], p['shift1']]
    in_specs = [
        pl.BlockSpec((Bt, T, Cin), lambda b: (b, 0, 0)),
        pl.BlockSpec(p['w0'].shape, lambda b: (0, 0, 0)),
        pl.BlockSpec(p['shift0'].shape, lambda b: (0, 0)),
        pl.BlockSpec(p['w1'].shape, lambda b: (0, 0, 0)),
        pl.BlockSpec(p['shift1'].shape, lambda b: (0, 0)),
    ]
    if has_ds:
        arrays.append(p['wds'])
        in_specs.append(pl.BlockSpec(p['wds'].shape, lambda b: (0, 0)))

    return pl.pallas_call(
        kern,
        out_shape=jax.ShapeDtypeStruct((B, T, out_ch), jnp.bfloat16),
        grid=grid,
        in_specs=in_specs,
        out_specs=pl.BlockSpec((Bt, T, out_ch), lambda b: (b, 0, 0)),
        compiler_params=pltpu.CompilerParams(
            dimension_semantics=("parallel",),
            vmem_limit_bytes=_vmem_limit_bytes(Bt, T, Cin, out_ch,
                                               len(p['offsets']), p['pad'])),
    )(*arrays)


# ----------------------------------------------------------------------------
# Parameter construction (deterministic, synthetic) + weight fusion
# ----------------------------------------------------------------------------
def _branch_offsets(kernel_sizes, dilation):
    """Tap offsets (into the pad-halo'd sequence) per branch + their union."""
    for k in kernel_sizes:
        # PyTorch symmetric Chomp1d requires an even chomp size.
        assert ((k - 1) * dilation) % 2 == 0, "symmetric chomp needs even (k-1)*dilation"
    k_max = max(kernel_sizes)
    pad = (k_max - 1) * dilation // 2
    per_branch, union = [], set()
    for k in kernel_sizes:
        base = pad - (k - 1) * dilation // 2
        offs = [base + t * dilation for t in range(k)]
        per_branch.append(offs)
        union.update(offs)
    return sorted(union), per_branch, pad


def _init_branch(key, cin, bout, k):
    """Conv1d(cin->bout, kernel=k, bias=True) + eval-mode BatchNorm1d folded."""
    kw, kb = jax.random.split(key)
    w = jax.random.normal(kw, (k, cin, bout), jnp.float32) / jnp.sqrt(cin * k)
    b = jax.random.normal(kb, (bout,), jnp.float32) * 0.1
    gamma = jnp.ones((bout,), jnp.float32)
    beta = jnp.zeros((bout,), jnp.float32)
    run_mean = jnp.zeros((bout,), jnp.float32)
    run_var = jnp.ones((bout,), jnp.float32)
    scale = gamma / jnp.sqrt(run_var + _BN_EPS)
    shift = beta - run_mean * scale + b * scale
    return w * scale[None, None, :], shift               # BN scale folded into taps


def _fuse_tap_weights(branch_ws, branch_shifts, kernel_sizes, dilation, cin, out_ch):
    """Stack every branch's taps into one (n_off, cin, out_ch) per-tap weight."""
    offsets, per_branch, pad = _branch_offsets(kernel_sizes, dilation)
    nb = len(kernel_sizes)
    bo = out_ch // nb
    W = jnp.zeros((len(offsets), cin, out_ch), jnp.float32)
    for j, (w_j, offs_j) in enumerate(zip(branch_ws, per_branch)):
        for t, off in enumerate(offs_j):
            W = W.at[offsets.index(off), :, j * bo:(j + 1) * bo].set(w_j[t])
    shift = jnp.concatenate(branch_shifts, axis=0).reshape(1, out_ch)
    return W.astype(jnp.bfloat16), shift, offsets, pad


def init_mb_tcn(key, num_inputs, num_channels, kernel_sizes):
    params = []
    nk = len(kernel_sizes)
    for i, out_ch in enumerate(num_channels):
        in_ch = num_inputs if i == 0 else num_channels[i - 1]
        assert out_ch % nk == 0
        bo = out_ch // nk
        dilation = 2 ** i
        key, *bks = jax.random.split(key, 2 * nk + 2)
        w0s, s0s = zip(*[_init_branch(bks[j], in_ch, bo, kernel_sizes[j])
                         for j in range(nk)])
        w1s, s1s = zip(*[_init_branch(bks[nk + j], out_ch, bo, kernel_sizes[j])
                         for j in range(nk)])
        w0, shift0, offsets, pad = _fuse_tap_weights(
            list(w0s), list(s0s), kernel_sizes, dilation, in_ch, out_ch)
        w1, shift1, _, _ = _fuse_tap_weights(
            list(w1s), list(s1s), kernel_sizes, dilation, out_ch, out_ch)
        # Same (unusual) downsample condition as the PyTorch module.
        if in_ch // nk != out_ch:
            kw, kb = jax.random.split(bks[-1])
            wds = (jax.random.normal(kw, (in_ch, out_ch), jnp.float32)
                   / jnp.sqrt(in_ch)).astype(jnp.bfloat16)
            bds = jax.random.normal(kb, (out_ch,), jnp.float32) * 0.1
            shift1 = shift1 + bds.reshape(1, out_ch)     # fold downsample bias
        else:
            assert in_ch == out_ch, "identity residual requires matching channel count"
            wds = None
        params.append(dict(w0=w0, shift0=shift0, w1=w1, shift1=shift1,
                           wds=wds, offsets=offsets, pad=pad))
    return params


# ----------------------------------------------------------------------------
# Forward pass: one fused Pallas call per TCN level
# ----------------------------------------------------------------------------
def mb_tcn_forward(params, x_ncl):
    x = jnp.transpose(x_ncl, (0, 2, 1))        # PyTorch NCL (B,C,T) -> (B,T,C)
    for p in params:
        x = mb_level_forward(x, p)             # bf16 between levels
    return jnp.transpose(x, (0, 2, 1)).astype(x_ncl.dtype)


# ----------------------------------------------------------------------------
if __name__ == "__main__":
    key = jax.random.PRNGKey(0)
    kx, kp = jax.random.split(key)

    # Small shapes consistent with the module (relu_type='relu', dwpw=False):
    B, C_in, T = 2, 8, 16
    num_channels = [16, 16]        # two TCN levels
    kernel_sizes = [3, 5]          # tcn_options['kernel_size']

    x_ncl = jax.random.normal(kx, (B, C_in, T), jnp.float32)
    params = init_mb_tcn(kp, C_in, num_channels, kernel_sizes)

    fwd = jax.jit(lambda x: mb_tcn_forward(params, x))
    out = fwd(x_ncl)
    jax.block_until_ready(out)

    assert out.shape == (B, num_channels[-1], T), out.shape
    assert jnp.all(jnp.isfinite(out))
    print("KERNEL_OK")
</pallas_src>

<mosaic_0001>
module attributes {stable_mosaic.version = 11 : i64} {
  func.func @_mb_level_kernel(%arg0: i32, %arg1: memref<1x16x8xf32, #tpu.memory_space<vmem>>, %arg2: memref<5x8x16xbf16, #tpu.memory_space<vmem>>, %arg3: memref<1x16xf32, #tpu.memory_space<vmem>>, %arg4: memref<5x16x16xbf16, #tpu.memory_space<vmem>>, %arg5: memref<1x16xf32, #tpu.memory_space<vmem>>, %arg6: memref<8x16xbf16, #tpu.memory_space<vmem>>, %arg7: memref<1x16x16xbf16, #tpu.memory_space<vmem>>) attributes {dimension_semantics = [#tpu.dimension_semantics<parallel>], iteration_bounds = array<i64: 2>, scalar_prefetch = 0 : i64, scratch_operands = 0 : i64, tpu.core_type = #tpu.core_type<tc>, window_params = [{transform_indices = @transform_0, window_bounds = array<i64: 1, 16, 8>}, {pipeline_mode = #tpu.pipeline_mode<synchronous>, transform_indices = @transform_1, window_bounds = array<i64: 5, 8, 16>}, {pipeline_mode = #tpu.pipeline_mode<synchronous>, transform_indices = @transform_2, window_bounds = array<i64: 1, 16>}, {pipeline_mode = #tpu.pipeline_mode<synchronous>, transform_indices = @transform_3, window_bounds = array<i64: 5, 16, 16>}, {pipeline_mode = #tpu.pipeline_mode<synchronous>, transform_indices = @transform_4, window_bounds = array<i64: 1, 16>}, {pipeline_mode = #tpu.pipeline_mode<synchronous>, transform_indices = @transform_5, window_bounds = array<i64: 8, 16>}, {transform_indices = @transform_6, window_bounds = array<i64: 1, 16, 16>}]} {
    %c0 = arith.constant 0 : index
    %c0_0 = arith.constant 0 : index
    %c0_1 = arith.constant 0 : index
    %0 = vector.load %arg1[%c0, %c0_0, %c0_1] : memref<1x16x8xf32, #tpu.memory_space<vmem>>, vector<1x16x8xf32>
    %1 = arith.truncf %0 : vector<1x16x8xf32> to vector<1x16x8xbf16>
    %cst = arith.constant 0.000000e+00 : bf16
    %2 = vector.broadcast %cst : bf16 to vector<1x2x8xbf16>
    %3 = tpu.concatenate %2, %1, %2 in 1 : vector<1x2x8xbf16>, vector<1x16x8xbf16>, vector<1x2x8xbf16> -> vector<1x20x8xbf16>
    %4 = vector.extract_strided_slice %3 {offsets = [0, 0, 0], sizes = [1, 16, 8], strides = [1, 1, 1]} : vector<1x20x8xbf16> to vector<1x16x8xbf16>
    %5 = vector.shape_cast %4 : vector<1x16x8xbf16> to vector<16x8xbf16>
    %c0_2 = arith.constant 0 : index
    %c0_3 = arith.constant 0 : index
    %c0_4 = arith.constant 0 : index
    %6 = vector.load %arg2[%c0_2, %c0_3, %c0_4] : memref<5x8x16xbf16, #tpu.memory_space<vmem>>, vector<1x8x16xbf16>
    %7 = vector.shape_cast %6 : vector<1x8x16xbf16> to vector<8x16xbf16>
    %cst_5 = arith.constant dense<0.000000e+00> : vector<16x16xf32>
    %8 = tpu.matmul %5, %7, %cst_5 {dimension_numbers = #tpu.dot_dimension_numbers<[1], [0], [0], [1], [0, 0, 1, 1], [], []>} : vector<16x8xbf16>, vector<8x16xbf16>, vector<16x16xf32> -> vector<16x16xf32>
    %9 = vector.extract_strided_slice %3 {offsets = [0, 1, 0], sizes = [1, 16, 8], strides = [1, 1, 1]} : vector<1x20x8xbf16> to vector<1x16x8xbf16>
    %10 = vector.shape_cast %9 : vector<1x16x8xbf16> to vector<16x8xbf16>
    %c1 = arith.constant 1 : index
    %c0_6 = arith.constant 0 : index
    %c0_7 = arith.constant 0 : index
    %11 = vector.load %arg2[%c1, %c0_6, %c0_7] : memref<5x8x16xbf16, #tpu.memory_space<vmem>>, vector<1x8x16xbf16>
    %12 = vector.shape_cast %11 : vector<1x8x16xbf16> to vector<8x16xbf16>
    %cst_8 = arith.constant dense<0.000000e+00> : vector<16x16xf32>
    %13 = tpu.matmul %10, %12, %cst_8 {dimension_numbers = #tpu.dot_dimension_numbers<[1], [0], [0], [1], [0, 0, 1, 1], [], []>} : vector<16x8xbf16>, vector<8x16xbf16>, vector<16x16xf32> -> vector<16x16xf32>
    %14 = arith.addf %8, %13 : vector<16x16xf32>
    %15 = vector.extract_strided_slice %3 {offsets = [0, 2, 0], sizes = [1, 16, 8], strides = [1, 1, 1]} : vector<1x20x8xbf16> to vector<1x16x8xbf16>
    %16 = vector.shape_cast %15 : vector<1x16x8xbf16> to vector<16x8xbf16>
    %c2 = arith.constant 2 : index
    %c0_9 = arith.constant 0 : index
    %c0_10 = arith.constant 0 : index
    %17 = vector.load %arg2[%c2, %c0_9, %c0_10] : memref<5x8x16xbf16, #tpu.memory_space<vmem>>, vector<1x8x16xbf16>
    %18 = vector.shape_cast %17 : vector<1x8x16xbf16> to vector<8x16xbf16>
    %cst_11 = arith.constant dense<0.000000e+00> : vector<16x16xf32>
    %19 = tpu.matmul %16, %18, %cst_11 {dimension_numbers = #tpu.dot_dimension_numbers<[1], [0], [0], [1], [0, 0, 1, 1], [], []>} : vector<16x8xbf16>, vector<8x16xbf16>, vector<16x16xf32> -> vector<16x16xf32>
    %20 = arith.addf %14, %19 : vector<16x16xf32>
    %21 = vector.extract_strided_slice %3 {offsets = [0, 3, 0], sizes = [1, 16, 8], strides = [1, 1, 1]} : vector<1x20x8xbf16> to vector<1x16x8xbf16>
    %22 = vector.shape_cast %21 : vector<1x16x8xbf16> to vector<16x8xbf16>
    %c3 = arith.constant 3 : index
    %c0_12 = arith.constant 0 : index
    %c0_13 = arith.constant 0 : index
    %23 = vector.load %arg2[%c3, %c0_12, %c0_13] : memref<5x8x16xbf16, #tpu.memory_space<vmem>>, vector<1x8x16xbf16>
    %24 = vector.shape_cast %23 : vector<1x8x16xbf16> to vector<8x16xbf16>
    %cst_14 = arith.constant dense<0.000000e+00> : vector<16x16xf32>
    %25 = tpu.matmul %22, %24, %cst_14 {dimension_numbers = #tpu.dot_dimension_numbers<[1], [0], [0], [1], [0, 0, 1, 1], [], []>} : vector<16x8xbf16>, vector<8x16xbf16>, vector<16x16xf32> -> vector<16x16xf32>
    %26 = arith.addf %20, %25 : vector<16x16xf32>
    %27 = vector.extract_strided_slice %3 {offsets = [0, 4, 0], sizes = [1, 16, 8], strides = [1, 1, 1]} : vector<1x20x8xbf16> to vector<1x16x8xbf16>
    %28 = vector.shape_cast %27 : vector<1x16x8xbf16> to vector<16x8xbf16>
    %c4 = arith.constant 4 : index
    %c0_15 = arith.constant 0 : index
    %c0_16 = arith.constant 0 : index
    %29 = vector.load %arg2[%c4, %c0_15, %c0_16] : memref<5x8x16xbf16, #tpu.memory_space<vmem>>, vector<1x8x16xbf16>
    %30 = vector.shape_cast %29 : vector<1x8x16xbf16> to vector<8x16xbf16>
    %cst_17 = arith.constant dense<0.000000e+00> : vector<16x16xf32>
    %31 = tpu.matmul %28, %30, %cst_17 {dimension_numbers = #tpu.dot_dimension_numbers<[1], [0], [0], [1], [0, 0, 1, 1], [], []>} : vector<16x8xbf16>, vector<8x16xbf16>, vector<16x16xf32> -> vector<16x16xf32>
    %32 = arith.addf %26, %31 : vector<16x16xf32>
    %c0_18 = arith.constant 0 : index
    %c0_19 = arith.constant 0 : index
    %33 = vector.load %arg3[%c0_18, %c0_19] : memref<1x16xf32, #tpu.memory_space<vmem>>, vector<1x16xf32>
    %34 = vector.broadcast %33 : vector<1x16xf32> to vector<16x16xf32>
    %35 = arith.addf %32, %34 : vector<16x16xf32>
    %cst_20 = arith.constant 0.000000e+00 : f32
    %36 = vector.broadcast %cst_20 : f32 to vector<16x16xf32>
    %37 = arith.maximumf %35, %36 : vector<16x16xf32>
    %38 = arith.truncf %37 : vector<16x16xf32> to vector<16x16xbf16>
    %39 = vector.shape_cast %38 : vector<16x16xbf16> to vector<1x16x16xbf16>
    %cst_21 = arith.constant 0.000000e+00 : bf16
    %40 = vector.broadcast %cst_21 : bf16 to vector<1x2x16xbf16>
    %41 = tpu.concatenate %40, %39, %40 in 1 : vector<1x2x16xbf16>, vector<1x16x16xbf16>, vector<1x2x16xbf16> -> vector<1x20x16xbf16>
    %42 = vector.extract_strided_slice %41 {offsets = [0, 0, 0], sizes = [1, 16, 16], strides = [1, 1, 1]} : vector<1x20x16xbf16> to vector<1x16x16xbf16>
    %43 = vector.shape_cast %42 : vector<1x16x16xbf16> to vector<16x16xbf16>
    %c0_22 = arith.constant 0 : index
    %c0_23 = arith.constant 0 : index
    %c0_24 = arith.constant 0 : index
    %44 = vector.load %arg4[%c0_22, %c0_23, %c0_24] : memref<5x16x16xbf16, #tpu.memory_space<vmem>>, vector<1x16x16xbf16>
    %45 = vector.shape_cast %44 : vector<1x16x16xbf16> to vector<16x16xbf16>
    %cst_25 = arith.constant dense<0.000000e+00> : vector<16x16xf32>
    %46 = tpu.matmul %43, %45, %cst_25 {dimension_numbers = #tpu.dot_dimension_numbers<[1], [0], [0], [1], [0, 0, 1, 1], [], []>} : vector<16x16xbf16>, vector<16x16xbf16>, vector<16x16xf32> -> vector<16x16xf32>
    %47 = vector.extract_strided_slice %41 {offsets = [0, 1, 0], sizes = [1, 16, 16], strides = [1, 1, 1]} : vector<1x20x16xbf16> to vector<1x16x16xbf16>
    %48 = vector.shape_cast %47 : vector<1x16x16xbf16> to vector<16x16xbf16>
    %c1_26 = arith.constant 1 : index
    %c0_27 = arith.constant 0 : index
    %c0_28 = arith.constant 0 : index
    %49 = vector.load %arg4[%c1_26, %c0_27, %c0_28] : memref<5x16x16xbf16, #tpu.memory_space<vmem>>, vector<1x16x16xbf16>
    %50 = vector.shape_cast %49 : vector<1x16x16xbf16> to vector<16x16xbf16>
    %cst_29 = arith.constant dense<0.000000e+00> : vector<16x16xf32>
    %51 = tpu.matmul %48, %50, %cst_29 {dimension_numbers = #tpu.dot_dimension_numbers<[1], [0], [0], [1], [0, 0, 1, 1], [], []>} : vector<16x16xbf16>, vector<16x16xbf16>, vector<16x16xf32> -> vector<16x16xf32>
    %52 = arith.addf %46, %51 : vector<16x16xf32>
    %53 = vector.extract_strided_slice %41 {offsets = [0, 2, 0], sizes = [1, 16, 16], strides = [1, 1, 1]} : vector<1x20x16xbf16> to vector<1x16x16xbf16>
    %54 = vector.shape_cast %53 : vector<1x16x16xbf16> to vector<16x16xbf16>
    %c2_30 = arith.constant 2 : index
    %c0_31 = arith.constant 0 : index
    %c0_32 = arith.constant 0 : index
    %55 = vector.load %arg4[%c2_30, %c0_31, %c0_32] : memref<5x16x16xbf16, #tpu.memory_space<vmem>>, vector<1x16x16xbf16>
    %56 = vector.shape_cast %55 : vector<1x16x16xbf16> to vector<16x16xbf16>
    %cst_33 = arith.constant dense<0.000000e+00> : vector<16x16xf32>
    %57 = tpu.matmul %54, %56, %cst_33 {dimension_numbers = #tpu.dot_dimension_numbers<[1], [0], [0], [1], [0, 0, 1, 1], [], []>} : vector<16x16xbf16>, vector<16x16xbf16>, vector<16x16xf32> -> vector<16x16xf32>
    %58 = arith.addf %52, %57 : vector<16x16xf32>
    %59 = vector.extract_strided_slice %41 {offsets = [0, 3, 0], sizes = [1, 16, 16], strides = [1, 1, 1]} : vector<1x20x16xbf16> to vector<1x16x16xbf16>
    %60 = vector.shape_cast %59 : vector<1x16x16xbf16> to vector<16x16xbf16>
    %c3_34 = arith.constant 3 : index
    %c0_35 = arith.constant 0 : index
    %c0_36 = arith.constant 0 : index
    %61 = vector.load %arg4[%c3_34, %c0_35, %c0_36] : memref<5x16x16xbf16, #tpu.memory_space<vmem>>, vector<1x16x16xbf16>
    %62 = vector.shape_cast %61 : vector<1x16x16xbf16> to vector<16x16xbf16>
    %cst_37 = arith.constant dense<0.000000e+00> : vector<16x16xf32>
    %63 = tpu.matmul %60, %62, %cst_37 {dimension_numbers = #tpu.dot_dimension_numbers<[1], [0], [0], [1], [0, 0, 1, 1], [], []>} : vector<16x16xbf16>, vector<16x16xbf16>, vector<16x16xf32> -> vector<16x16xf32>
    %64 = arith.addf %58, %63 : vector<16x16xf32>
    %65 = vector.extract_strided_slice %41 {offsets = [0, 4, 0], sizes = [1, 16, 16], strides = [1, 1, 1]} : vector<1x20x16xbf16> to vector<1x16x16xbf16>
    %66 = vector.shape_cast %65 : vector<1x16x16xbf16> to vector<16x16xbf16>
    %c4_38 = arith.constant 4 : index
    %c0_39 = arith.constant 0 : index
    %c0_40 = arith.constant 0 : index
    %67 = vector.load %arg4[%c4_38, %c0_39, %c0_40] : memref<5x16x16xbf16, #tpu.memory_space<vmem>>, vector<1x16x16xbf16>
    %68 = vector.shape_cast %67 : vector<1x16x16xbf16> to vector<16x16xbf16>
    %cst_41 = arith.constant dense<0.000000e+00> : vector<16x16xf32>
    %69 = tpu.matmul %66, %68, %cst_41 {dimension_numbers = #tpu.dot_dimension_numbers<[1], [0], [0], [1], [0, 0, 1, 1], [], []>} : vector<16x16xbf16>, vector<16x16xbf16>, vector<16x16xf32> -> vector<16x16xf32>
    %70 = arith.addf %64, %69 : vector<16x16xf32>
    %71 = vector.shape_cast %1 : vector<1x16x8xbf16> to vector<16x8xbf16>
    %c0_42 = arith.constant 0 : index
    %c0_43 = arith.constant 0 : index
    %72 = vector.load %arg6[%c0_42, %c0_43] : memref<8x16xbf16, #tpu.memory_space<vmem>>, vector<8x16xbf16>
    %cst_44 = arith.constant dense<0.000000e+00> : vector<16x16xf32>
    %73 = tpu.matmul %71, %72, %cst_44 {dimension_numbers = #tpu.dot_dimension_numbers<[1], [0], [0], [1], [0, 0, 1, 1], [], []>} : vector<16x8xbf16>, vector<8x16xbf16>, vector<16x16xf32> -> vector<16x16xf32>
    %74 = arith.addf %70, %73 : vector<16x16xf32>
    %c0_45 = arith.constant 0 : index
    %c0_46 = arith.constant 0 : index
    %75 = vector.load %arg5[%c0_45, %c0_46] : memref<1x16xf32, #tpu.memory_space<vmem>>, vector<1x16xf32>
    %76 = vector.broadcast %75 : vector<1x16xf32> to vector<16x16xf32>
    %77 = arith.addf %74, %76 : vector<16x16xf32>
    %cst_47 = arith.constant 0.000000e+00 : f32
    %78 = vector.broadcast %cst_47 : f32 to vector<16x16xf32>
    %79 = arith.maximumf %77, %78 : vector<16x16xf32>
    %80 = vector.shape_cast %79 : vector<16x16xf32> to vector<1x16x16xf32>
    %81 = arith.truncf %80 : vector<1x16x16xf32> to vector<1x16x16xbf16>
    %c0_48 = arith.constant 0 : index
    %c0_49 = arith.constant 0 : index
    %c0_50 = arith.constant 0 : index
    %82 = vector.load %arg7[%c0_48, %c0_49, %c0_50] : memref<1x16x16xbf16, #tpu.memory_space<vmem>>, vector<1x16x16xbf16>
    tpu.vector_store %arg7[%c0_48, %c0_49, %c0_50], %81 {strides = array<i32>} : memref<1x16x16xbf16, #tpu.memory_space<vmem>>, vector<1x16x16xbf16>,
    return
  }
  func.func @transform_0(%arg0: i32) -> (i32, i32, i32) {
    %c0_i32 = arith.constant 0 : i32
    %c0_i32_0 = arith.constant 0 : i32
    %c0_i32_1 = arith.constant 0 : i32
    return %arg0, %c0_i32, %c0_i32_0 : i32, i32, i32
  }
  func.func @transform_1(%arg0: i32) -> (i32, i32, i32) {
    %c0_i32 = arith.constant 0 : i32
    %c0_i32_0 = arith.constant 0 : i32
    %c0_i32_1 = arith.constant 0 : i32
    %c0_i32_2 = arith.constant 0 : i32
    return %c0_i32, %c0_i32_0, %c0_i32_1 : i32, i32, i32
  }
  func.func @transform_2(%arg0: i32) -> (i32, i32) {
    %c0_i32 = arith.constant 0 : i32
    %c0_i32_0 = arith.constant 0 : i32
    %c0_i32_1 = arith.constant 0 : i32
    return %c0_i32, %c0_i32_0 : i32, i32
  }
  func.func @transform_3(%arg0: i32) -> (i32, i32, i32) {
    %c0_i32 = arith.constant 0 : i32
    %c0_i32_0 = arith.constant 0 : i32
    %c0_i32_1 = arith.constant 0 : i32
    %c0_i32_2 = arith.constant 0 : i32
    return %c0_i32, %c0_i32_0, %c0_i32_1 : i32, i32, i32
  }
  func.func @transform_4(%arg0: i32) -> (i32, i32) {
    %c0_i32 = arith.constant 0 : i32
    %c0_i32_0 = arith.constant 0 : i32
    %c0_i32_1 = arith.constant 0 : i32
    return %c0_i32, %c0_i32_0 : i32, i32
  }
  func.func @transform_5(%arg0: i32) -> (i32, i32) {
    %c0_i32 = arith.constant 0 : i32
    %c0_i32_0 = arith.constant 0 : i32
    %c0_i32_1 = arith.constant 0 : i32
    return %c0_i32, %c0_i32_0 : i32, i32
  }
  func.func @transform_6(%arg0: i32) -> (i32, i32, i32) {
    %c0_i32 = arith.constant 0 : i32
    %c0_i32_0 = arith.constant 0 : i32
    %c0_i32_1 = arith.constant 0 : i32
    return %arg0, %c0_i32, %c0_i32_0 : i32, i32, i32
  }
}

module attributes {stable_mosaic.version = 11 : i64} {
  func.func @_mb_level_kernel(%arg0: i32, %arg1: memref<1x16x16xbf16, #tpu.memory_space<vmem>>, %arg2: memref<5x16x16xbf16, #tpu.memory_space<vmem>>, %arg3: memref<1x16xf32, #tpu.memory_space<vmem>>, %arg4: memref<5x16x16xbf16, #tpu.memory_space<vmem>>, %arg5: memref<1x16xf32, #tpu.memory_space<vmem>>, %arg6: memref<16x16xbf16, #tpu.memory_space<vmem>>, %arg7: memref<1x16x16xbf16, #tpu.memory_space<vmem>>) attributes {dimension_semantics = [#tpu.dimension_semantics<parallel>], iteration_bounds = array<i64: 2>, scalar_prefetch = 0 : i64, scratch_operands = 0 : i64, tpu.core_type = #tpu.core_type<tc>, window_params = [{transform_indices = @transform_0, window_bounds = array<i64: 1, 16, 16>}, {pipeline_mode = #tpu.pipeline_mode<synchronous>, transform_indices = @transform_1, window_bounds = array<i64: 5, 16, 16>}, {pipeline_mode = #tpu.pipeline_mode<synchronous>, transform_indices = @transform_2, window_bounds = array<i64: 1, 16>}, {pipeline_mode = #tpu.pipeline_mode<synchronous>, transform_indices = @transform_3, window_bounds = array<i64: 5, 16, 16>}, {pipeline_mode = #tpu.pipeline_mode<synchronous>, transform_indices = @transform_4, window_bounds = array<i64: 1, 16>}, {pipeline_mode = #tpu.pipeline_mode<synchronous>, transform_indices = @transform_5, window_bounds = array<i64: 16, 16>}, {transform_indices = @transform_6, window_bounds = array<i64: 1, 16, 16>}]} {
    %c0 = arith.constant 0 : index
    %c0_0 = arith.constant 0 : index
    %c0_1 = arith.constant 0 : index
    %0 = vector.load %arg1[%c0, %c0_0, %c0_1] : memref<1x16x16xbf16, #tpu.memory_space<vmem>>, vector<1x16x16xbf16>
    %cst = arith.constant 0.000000e+00 : bf16
    %1 = vector.broadcast %cst : bf16 to vector<1x4x16xbf16>
    %2 = tpu.concatenate %1, %0, %1 in 1 : vector<1x4x16xbf16>, vector<1x16x16xbf16>, vector<1x4x16xbf16> -> vector<1x24x16xbf16>
    %3 = vector.extract_strided_slice %2 {offsets = [0, 0, 0], sizes = [1, 16, 16], strides = [1, 1, 1]} : vector<1x24x16xbf16> to vector<1x16x16xbf16>
    %4 = vector.shape_cast %3 : vector<1x16x16xbf16> to vector<16x16xbf16>
    %c0_2 = arith.constant 0 : index
    %c0_3 = arith.constant 0 : index
    %c0_4 = arith.constant 0 : index
    %5 = vector.load %arg2[%c0_2, %c0_3, %c0_4] : memref<5x16x16xbf16, #tpu.memory_space<vmem>>, vector<1x16x16xbf16>
    %6 = vector.shape_cast %5 : vector<1x16x16xbf16> to vector<16x16xbf16>
    %cst_5 = arith.constant dense<0.000000e+00> : vector<16x16xf32>
    %7 = tpu.matmul %4, %6, %cst_5 {dimension_numbers = #tpu.dot_dimension_numbers<[1], [0], [0], [1], [0, 0, 1, 1], [], []>} : vector<16x16xbf16>, vector<16x16xbf16>, vector<16x16xf32> -> vector<16x16xf32>
    %8 = vector.extract_strided_slice %2 {offsets = [0, 2, 0], sizes = [1, 16, 16], strides = [1, 1, 1]} : vector<1x24x16xbf16> to vector<1x16x16xbf16>
    %9 = vector.shape_cast %8 : vector<1x16x16xbf16> to vector<16x16xbf16>
    %c1 = arith.constant 1 : index
    %c0_6 = arith.constant 0 : index
    %c0_7 = arith.constant 0 : index
    %10 = vector.load %arg2[%c1, %c0_6, %c0_7] : memref<5x16x16xbf16, #tpu.memory_space<vmem>>, vector<1x16x16xbf16>
    %11 = vector.shape_cast %10 : vector<1x16x16xbf16> to vector<16x16xbf16>
    %cst_8 = arith.constant dense<0.000000e+00> : vector<16x16xf32>
    %12 = tpu.matmul %9, %11, %cst_8 {dimension_numbers = #tpu.dot_dimension_numbers<[1], [0], [0], [1], [0, 0, 1, 1], [], []>} : vector<16x16xbf16>, vector<16x16xbf16>, vector<16x16xf32> -> vector<16x16xf32>
    %13 = arith.addf %7, %12 : vector<16x16xf32>
    %14 = vector.extract_strided_slice %2 {offsets = [0, 4, 0], sizes = [1, 16, 16], strides = [1, 1, 1]} : vector<1x24x16xbf16> to vector<1x16x16xbf16>
    %15 = vector.shape_cast %14 : vector<1x16x16xbf16> to vector<16x16xbf16>
    %c2 = arith.constant 2 : index
    %c0_9 = arith.constant 0 : index
    %c0_10 = arith.constant 0 : index
    %16 = vector.load %arg2[%c2, %c0_9, %c0_10] : memref<5x16x16xbf16, #tpu.memory_space<vmem>>, vector<1x16x16xbf16>
    %17 = vector.shape_cast %16 : vector<1x16x16xbf16> to vector<16x16xbf16>
    %cst_11 = arith.constant dense<0.000000e+00> : vector<16x16xf32>
    %18 = tpu.matmul %15, %17, %cst_11 {dimension_numbers = #tpu.dot_dimension_numbers<[1], [0], [0], [1], [0, 0, 1, 1], [], []>} : vector<16x16xbf16>, vector<16x16xbf16>, vector<16x16xf32> -> vector<16x16xf32>
    %19 = arith.addf %13, %18 : vector<16x16xf32>
    %20 = vector.extract_strided_slice %2 {offsets = [0, 6, 0], sizes = [1, 16, 16], strides = [1, 1, 1]} : vector<1x24x16xbf16> to vector<1x16x16xbf16>
    %21 = vector.shape_cast %20 : vector<1x16x16xbf16> to vector<16x16xbf16>
    %c3 = arith.constant 3 : index
    %c0_12 = arith.constant 0 : index
    %c0_13 = arith.constant 0 : index
    %22 = vector.load %arg2[%c3, %c0_12, %c0_13] : memref<5x16x16xbf16, #tpu.memory_space<vmem>>, vector<1x16x16xbf16>
    %23 = vector.shape_cast %22 : vector<1x16x16xbf16> to vector<16x16xbf16>
    %cst_14 = arith.constant dense<0.000000e+00> : vector<16x16xf32>
    %24 = tpu.matmul %21, %23, %cst_14 {dimension_numbers = #tpu.dot_dimension_numbers<[1], [0], [0], [1], [0, 0, 1, 1], [], []>} : vector<16x16xbf16>, vector<16x16xbf16>, vector<16x16xf32> -> vector<16x16xf32>
    %25 = arith.addf %19, %24 : vector<16x16xf32>
    %26 = vector.extract_strided_slice %2 {offsets = [0, 8, 0], sizes = [1, 16, 16], strides = [1, 1, 1]} : vector<1x24x16xbf16> to vector<1x16x16xbf16>
    %27 = vector.shape_cast %26 : vector<1x16x16xbf16> to vector<16x16xbf16>
    %c4 = arith.constant 4 : index
    %c0_15 = arith.constant 0 : index
    %c0_16 = arith.constant 0 : index
    %28 = vector.load %arg2[%c4, %c0_15, %c0_16] : memref<5x16x16xbf16, #tpu.memory_space<vmem>>, vector<1x16x16xbf16>
    %29 = vector.shape_cast %28 : vector<1x16x16xbf16> to vector<16x16xbf16>
    %cst_17 = arith.constant dense<0.000000e+00> : vector<16x16xf32>
    %30 = tpu.matmul %27, %29, %cst_17 {dimension_numbers = #tpu.dot_dimension_numbers<[1], [0], [0], [1], [0, 0, 1, 1], [], []>} : vector<16x16xbf16>, vector<16x16xbf16>, vector<16x16xf32> -> vector<16x16xf32>
    %31 = arith.addf %25, %30 : vector<16x16xf32>
    %c0_18 = arith.constant 0 : index
    %c0_19 = arith.constant 0 : index
    %32 = vector.load %arg3[%c0_18, %c0_19] : memref<1x16xf32, #tpu.memory_space<vmem>>, vector<1x16xf32>
    %33 = vector.broadcast %32 : vector<1x16xf32> to vector<16x16xf32>
    %34 = arith.addf %31, %33 : vector<16x16xf32>
    %cst_20 = arith.constant 0.000000e+00 : f32
    %35 = vector.broadcast %cst_20 : f32 to vector<16x16xf32>
    %36 = arith.maximumf %34, %35 : vector<16x16xf32>
    %37 = arith.truncf %36 : vector<16x16xf32> to vector<16x16xbf16>
    %38 = vector.shape_cast %37 : vector<16x16xbf16> to vector<1x16x16xbf16>
    %cst_21 = arith.constant 0.000000e+00 : bf16
    %39 = vector.broadcast %cst_21 : bf16 to vector<1x4x16xbf16>
    %40 = tpu.concatenate %39, %38, %39 in 1 : vector<1x4x16xbf16>, vector<1x16x16xbf16>, vector<1x4x16xbf16> -> vector<1x24x16xbf16>
    %41 = vector.extract_strided_slice %40 {offsets = [0, 0, 0], sizes = [1, 16, 16], strides = [1, 1, 1]} : vector<1x24x16xbf16> to vector<1x16x16xbf16>
    %42 = vector.shape_cast %41 : vector<1x16x16xbf16> to vector<16x16xbf16>
    %c0_22 = arith.constant 0 : index
    %c0_23 = arith.constant 0 : index
    %c0_24 = arith.constant 0 : index
    %43 = vector.load %arg4[%c0_22, %c0_23, %c0_24] : memref<5x16x16xbf16, #tpu.memory_space<vmem>>, vector<1x16x16xbf16>
    %44 = vector.shape_cast %43 : vector<1x16x16xbf16> to vector<16x16xbf16>
    %cst_25 = arith.constant dense<0.000000e+00> : vector<16x16xf32>
    %45 = tpu.matmul %42, %44, %cst_25 {dimension_numbers = #tpu.dot_dimension_numbers<[1], [0], [0], [1], [0, 0, 1, 1], [], []>} : vector<16x16xbf16>, vector<16x16xbf16>, vector<16x16xf32> -> vector<16x16xf32>
    %46 = vector.extract_strided_slice %40 {offsets = [0, 2, 0], sizes = [1, 16, 16], strides = [1, 1, 1]} : vector<1x24x16xbf16> to vector<1x16x16xbf16>
    %47 = vector.shape_cast %46 : vector<1x16x16xbf16> to vector<16x16xbf16>
    %c1_26 = arith.constant 1 : index
    %c0_27 = arith.constant 0 : index
    %c0_28 = arith.constant 0 : index
    %48 = vector.load %arg4[%c1_26, %c0_27, %c0_28] : memref<5x16x16xbf16, #tpu.memory_space<vmem>>, vector<1x16x16xbf16>
    %49 = vector.shape_cast %48 : vector<1x16x16xbf16> to vector<16x16xbf16>
    %cst_29 = arith.constant dense<0.000000e+00> : vector<16x16xf32>
    %50 = tpu.matmul %47, %49, %cst_29 {dimension_numbers = #tpu.dot_dimension_numbers<[1], [0], [0], [1], [0, 0, 1, 1], [], []>} : vector<16x16xbf16>, vector<16x16xbf16>, vector<16x16xf32> -> vector<16x16xf32>
    %51 = arith.addf %45, %50 : vector<16x16xf32>
    %52 = vector.extract_strided_slice %40 {offsets = [0, 4, 0], sizes = [1, 16, 16], strides = [1, 1, 1]} : vector<1x24x16xbf16> to vector<1x16x16xbf16>
    %53 = vector.shape_cast %52 : vector<1x16x16xbf16> to vector<16x16xbf16>
    %c2_30 = arith.constant 2 : index
    %c0_31 = arith.constant 0 : index
    %c0_32 = arith.constant 0 : index
    %54 = vector.load %arg4[%c2_30, %c0_31, %c0_32] : memref<5x16x16xbf16, #tpu.memory_space<vmem>>, vector<1x16x16xbf16>
    %55 = vector.shape_cast %54 : vector<1x16x16xbf16> to vector<16x16xbf16>
    %cst_33 = arith.constant dense<0.000000e+00> : vector<16x16xf32>
    %56 = tpu.matmul %53, %55, %cst_33 {dimension_numbers = #tpu.dot_dimension_numbers<[1], [0], [0], [1], [0, 0, 1, 1], [], []>} : vector<16x16xbf16>, vector<16x16xbf16>, vector<16x16xf32> -> vector<16x16xf32>
    %57 = arith.addf %51, %56 : vector<16x16xf32>
    %58 = vector.extract_strided_slice %40 {offsets = [0, 6, 0], sizes = [1, 16, 16], strides = [1, 1, 1]} : vector<1x24x16xbf16> to vector<1x16x16xbf16>
    %59 = vector.shape_cast %58 : vector<1x16x16xbf16> to vector<16x16xbf16>
    %c3_34 = arith.constant 3 : index
    %c0_35 = arith.constant 0 : index
    %c0_36 = arith.constant 0 : index
    %60 = vector.load %arg4[%c3_34, %c0_35, %c0_36] : memref<5x16x16xbf16, #tpu.memory_space<vmem>>, vector<1x16x16xbf16>
    %61 = vector.shape_cast %60 : vector<1x16x16xbf16> to vector<16x16xbf16>
    %cst_37 = arith.constant dense<0.000000e+00> : vector<16x16xf32>
    %62 = tpu.matmul %59, %61, %cst_37 {dimension_numbers = #tpu.dot_dimension_numbers<[1], [0], [0], [1], [0, 0, 1, 1], [], []>} : vector<16x16xbf16>, vector<16x16xbf16>, vector<16x16xf32> -> vector<16x16xf32>
    %63 = arith.addf %57, %62 : vector<16x16xf32>
    %64 = vector.extract_strided_slice %40 {offsets = [0, 8, 0], sizes = [1, 16, 16], strides = [1, 1, 1]} : vector<1x24x16xbf16> to vector<1x16x16xbf16>
    %65 = vector.shape_cast %64 : vector<1x16x16xbf16> to vector<16x16xbf16>
    %c4_38 = arith.constant 4 : index
    %c0_39 = arith.constant 0 : index
    %c0_40 = arith.constant 0 : index
    %66 = vector.load %arg4[%c4_38, %c0_39, %c0_40] : memref<5x16x16xbf16, #tpu.memory_space<vmem>>, vector<1x16x16xbf16>
    %67 = vector.shape_cast %66 : vector<1x16x16xbf16> to vector<16x16xbf16>
    %cst_41 = arith.constant dense<0.000000e+00> : vector<16x16xf32>
    %68 = tpu.matmul %65, %67, %cst_41 {dimension_numbers = #tpu.dot_dimension_numbers<[1], [0], [0], [1], [0, 0, 1, 1], [], []>} : vector<16x16xbf16>, vector<16x16xbf16>, vector<16x16xf32> -> vector<16x16xf32>
    %69 = arith.addf %63, %68 : vector<16x16xf32>
    %70 = vector.shape_cast %0 : vector<1x16x16xbf16> to vector<16x16xbf16>
    %c0_42 = arith.constant 0 : index
    %c0_43 = arith.constant 0 : index
    %71 = vector.load %arg6[%c0_42, %c0_43] : memref<16x16xbf16, #tpu.memory_space<vmem>>, vector<16x16xbf16>
    %cst_44 = arith.constant dense<0.000000e+00> : vector<16x16xf32>
    %72 = tpu.matmul %70, %71, %cst_44 {dimension_numbers = #tpu.dot_dimension_numbers<[1], [0], [0], [1], [0, 0, 1, 1], [], []>} : vector<16x16xbf16>, vector<16x16xbf16>, vector<16x16xf32> -> vector<16x16xf32>
    %73 = arith.addf %69, %72 : vector<16x16xf32>
    %c0_45 = arith.constant 0 : index
    %c0_46 = arith.constant 0 : index
    %74 = vector.load %arg5[%c0_45, %c0_46] : memref<1x16xf32, #tpu.memory_space<vmem>>, vector<1x16xf32>
    %75 = vector.broadcast %74 : vector<1x16xf32> to vector<16x16xf32>
    %76 = arith.addf %73, %75 : vector<16x16xf32>
    %cst_47 = arith.constant 0.000000e+00 : f32
    %77 = vector.broadcast %cst_47 : f32 to vector<16x16xf32>
    %78 = arith.maximumf %76, %77 : vector<16x16xf32>
    %79 = vector.shape_cast %78 : vector<16x16xf32> to vector<1x16x16xf32>
    %80 = arith.truncf %79 : vector<1x16x16xf32> to vector<1x16x16xbf16>
    %c0_48 = arith.constant 0 : index
    %c0_49 = arith.constant 0 : index
    %c0_50 = arith.constant 0 : index
    %81 = vector.load %arg7[%c0_48, %c0_49, %c0_50] : memref<1x16x16xbf16, #tpu.memory_space<vmem>>, vector<1x16x16xbf16>
    tpu.vector_store %arg7[%c0_48, %c0_49, %c0_50], %80 {strides = array<i32>} : memref<1x16x16xbf16, #tpu.memory_space<vmem>>, vector<1x16x16xbf16>,
    return
  }
  func.func @transform_0(%arg0: i32) -> (i32, i32, i32) {
    %c0_i32 = arith.constant 0 : i32
    %c0_i32_0 = arith.constant 0 : i32
    %c0_i32_1 = arith.constant 0 : i32
    return %arg0, %c0_i32, %c0_i32_0 : i32, i32, i32
  }
  func.func @transform_1(%arg0: i32) -> (i32, i32, i32) {
    %c0_i32 = arith.constant 0 : i32
    %c0_i32_0 = arith.constant 0 : i32
    %c0_i32_1 = arith.constant 0 : i32
    %c0_i32_2 = arith.constant 0 : i32
    return %c0_i32, %c0_i32_0, %c0_i32_1 : i32, i32, i32
  }
  func.func @transform_2(%arg0: i32) -> (i32, i32) {
    %c0_i32 = arith.constant 0 : i32
    %c0_i32_0 = arith.constant 0 : i32
    %c0_i32_1 = arith.constant 0 : i32
    return %c0_i32, %c0_i32_0 : i32, i32
  }
  func.func @transform_3(%arg0: i32) -> (i32, i32, i32) {
    %c0_i32 = arith.constant 0 : i32
    %c0_i32_0 = arith.constant 0 : i32
    %c0_i32_1 = arith.constant 0 : i32
    %c0_i32_2 = arith.constant 0 : i32
    return %c0_i32, %c0_i32_0, %c0_i32_1 : i32, i32, i32
  }
  func.func @transform_4(%arg0: i32) -> (i32, i32) {
    %c0_i32 = arith.constant 0 : i32
    %c0_i32_0 = arith.constant 0 : i32
    %c0_i32_1 = arith.constant 0 : i32
    return %c0_i32, %c0_i32_0 : i32, i32
  }
  func.func @transform_5(%arg0: i32) -> (i32, i32) {
    %c0_i32 = arith.constant 0 : i32
    %c0_i32_0 = arith.constant 0 : i32
    %c0_i32_1 = arith.constant 0 : i32
    return %c0_i32, %c0_i32_0 : i32, i32
  }
  func.func @transform_6(%arg0: i32) -> (i32, i32, i32) {
    %c0_i32 = arith.constant 0 : i32
    %c0_i32_0 = arith.constant 0 : i32
    %c0_i32_1 = arith.constant 0 : i32
    return %arg0, %c0_i32, %c0_i32_0 : i32, i32, i32
  }
}

</mosaic_0001>

<bundles_post_ra>
// kernel: _lambda_.3
= control target key start
LH: loop header
LB: loop body
LE: loop exit
PB: predicated region body
PF: predicated region fallthrough
CT: control target
= control target key end

     0   :  { %s1198_s21 = smov 0   ;;  %s1321_s0 = inlined_call_operand.vmem [shape: bf16[2,16,16], index: 0, kind: input, shape index: {}]   ;;  %s1322_s1 = inlined_call_operand.vmem [shape: bf16[5,16,16], index: 1, kind: input, shape index: {}]   ;;  %s1323_s2 = inlined_call_operand.vmem [shape: f32[1,16], index: 2, kind: input, shape index: {}]   ;;  %s1324_s3 = inlined_call_operand.vmem [shape: bf16[5,16,16], index: 3, kind: input, shape index: {}]   ;;  %s1325_s4 = inlined_call_operand.vmem [shape: f32[1,16], index: 4, kind: input, shape index: {}]   ;;  %s1326_s5 = inlined_call_operand.vmem [shape: bf16[16,16], index: 5, kind: input, shape index: {}]   ;;  %s1327_s6 = inlined_call_operand.vmem [shape: bf16[2,16,16], index: 6, kind: output, shape index: {}]  }
   0x1 LB: > { %s985_s22 = sadd.s32 4294967295, %s1159_s21   ;;  %p989_p0 = scmp.ge.s32.totalorder %s1159_s21, 1  ;;  %s1159_s21 = sphi %s1198_s21, %s16_s21  }
   0x2   : > { %p212_p1 = scmp.lt.s32.totalorder %s1159_s21, 3 }
   0x4   : > { %p213_p2 = pnand %p989_p0, %p212_p1 }
   0x5   : > { %v1141_v0 = vld [vmem:[%s1322_s1 + $0x8] sm:$0xff] (!%p213_p2)   ;;  %v1161_v1 = vmov (!%p213_p2), 0.0   ;;  %v1142_v2 = vld [vmem:[%s1322_s1] sm:$0xff] (!%p213_p2)   ;;  %vm1162_vm0 = vmmov (!%p213_p2), 0   ;;  %p242_p3 = scmp.lt.s32.totalorder (!%p213_p2), %s985_s22, 1  ;;  %vm261_vm1 = vcmask (!%p213_p2), 1041408  }
   0x6   : > { %216 = sbr.rel (%p213_p2) target bundleno = 508 (0x1fc), region = 44  ;;  %1065 = vmatprep.subr.bf16.mxu0 (!%p213_p2), %v1161_v1  ;;  %1071 = vmatprep.subr.bf16.mxu1 (!%p213_p2), %v1161_v1  ;;  %vm283_vm2 = vcmask (!%p213_p2), 130048   ;;  %v1145_v5 = vld [vmem:[%s1322_s1 + $0x18] sm:$0xff] (!%p213_p2)   ;;  %vm273_vm3 = vcmask (!%p213_p2), 1046528   ;;  %v1144_v10 = vld [vmem:[%s1322_s1 + $0x10] sm:$0xff] (!%p213_p2)   ;;  %vm439_vm4 = vcmask (!%p213_p2), 1044480  }
   0x7   : > { %1066 = vmatpush3.bf16.msra.mxu0 (!%p213_p2), %v1141_v0  ;;  %1067 = vmatprep.mubr.msk.bf16.mxu0 (!%p213_p2), %vm1162_vm0, %v1161_v1  ;;  %vm380_vm5 = vcmask (!%p213_p2), 1045504   ;;  %v1146_v18 = vld [vmem:[%s1322_s1 + $0x20] sm:$0xff] (!%p213_p2)   ;;  %vm498_vm6 = vcmask (!%p213_p2), 1043456   ;;  %v1147_v23 = vld [vmem:[%s1324_s3 + $0x8] sm:$0xff] (!%p213_p2)   ;;  %v1150_v59 = vld [vmem:[%s1324_s3 + $0x18] sm:$0xff] (!%p213_p2)   ;;  %vm927_vm7 = vcmask (!%p213_p2), 125952  }
   0x8   : > { %1072 = vmatpush3.bf16.msra.mxu1 (!%p213_p2), %v1142_v2  ;;  %1073 = vmatprep.mubr.msk.bf16.mxu1 (!%p213_p2), %vm1162_vm0, %v1161_v1  ;;  %v1148_v22 = vld [vmem:[%s1324_s3] sm:$0xff] (!%p213_p2)   ;;  %v1149_v0 = vld [vmem:[%s1324_s3 + $0x10] sm:$0xff] (!%p213_p2)  }
   0x9   : > { %1077 = vmatprep.subr.bf16.mxu0 (!%p213_p2), %v1161_v1  ;;  %1083 = vmatprep.subr.bf16.mxu1 (!%p213_p2), %v1161_v1  ;;  %v1013_v47 = vld [vmem:[%s1323_s2] ss:$0 sm:$0xff] (!%p213_p2) }
   0xd   : > { %s1329_s22 = smov (!%p242_p3, %s985_s22), 1 }
   0xe   : > { %s1039_s27 = sshll.u32 %s1329_s22, 3 }
   0xf   : > { %s246_s30 = scalar_lea.vmem %s1321_s0, %s1039_s27  ;;  %s251_s10 = scalar_lea.vmem %s1327_s6, %s1039_s27 }
  0x10   : > { %v1228_v3 = vld [vmem:[%s246_s30] sm:$0xff]  }
  0x11   : > { %v260_v4 = vrot.slane %v1228_v3, 6 }
  0x13   : > { %v264_v6 = vsel %vm261_vm1, 0, %v260_v4  ;;  %v265_v7 = vsel %vm261_vm1, %v260_v4, 0 }
  0x14   : > { %v274_v8 = vrot.slane %v264_v6, 1  ;;  %v275_v9 = vrot.slane %v265_v7, 1  ;;  %1074 = vmatmul.mubr.msk.bf16.vlgmr.msra.gmra.mrb[0].mxu1 %vm283_vm2, %v264_v6  ;;  %v440_v11 = vrot.slane %v264_v6, 3  ;;  %v441_v12 = vrot.slane %v265_v7, 3 }
  0x15   : > { %1084 = vmatpush3.bf16.msra.mxu1 %v1145_v5  ;;  %1085 = vmatprep.mubr.msk.bf16.mxu1 %vm1162_vm0, %v1161_v1  ;;  %v381_v14 = vrot.slane %v264_v6, 2  ;;  %v382_v15 = vrot.slane %v265_v7, 2  ;;  %v499_v19 = vrot.slane %v264_v6, 4  ;;  %v500_v20 = vrot.slane %v265_v7, 4  ;;  %v1152_v6 = vld [vmem:[%s1326_s5] sm:$0xff]  }
  0x16   : > { %v276_v13 = vsel %vm273_vm3, %v274_v8, %v275_v9  ;;  %1095 = vmatprep.subr.bf16.mxu1 %v1161_v1  ;;  %v442_v16 = vsel %vm439_vm4, %v440_v11, %v441_v12 }
  0x17   : > { %1068 = vmatmul.mubr.msk.bf16.vlgmr.msra.gmra.mrb[0].mxu0 %vm283_vm2, %v276_v13  ;;  %v383_v17 = vsel %vm380_vm5, %v381_v14, %v382_v15  ;;  %v501_v21 = vsel %vm498_vm6, %v499_v19, %v500_v20 }
  0x18   : > { %1078 = vmatpush3.bf16.msra.mxu0 %v1144_v10  ;;  %1079 = vmatprep.mubr.msk.bf16.mxu0 %vm1162_vm0, %v1161_v1  ;;  %v1151_v10 = vld [vmem:[%s1324_s3 + $0x20] sm:$0xff]  }
  0x19   : > { %1089 = vmatprep.subr.bf16.mxu0 %v1161_v1 }
  0x1c   : > { %1086 = vmatmul.mubr.msk.bf16.vlgmr.msra.gmra.mrb[4].mxu1 %vm283_vm2, %v442_v16 }
  0x1d   : > { %1097 = vmatprep.mubr.msk.bf16.mxu1 %vm1162_vm0, %v1161_v1  ;;  %1096 = vmatpush3.bf16.msra.mxu1 %v1147_v23 }
  0x1e   : > { %1107 = vmatprep.subr.bf16.mxu1 %v1161_v1 }
  0x1f   : > { %1080 = vmatmul.mubr.msk.bf16.vlgmr.msra.gmra.mrb[4].mxu0 %vm283_vm2, %v383_v17 }
  0x20   : > { %1090 = vmatpush3.bf16.msra.mxu0 %v1146_v18  ;;  %1091 = vmatprep.mubr.msk.bf16.mxu0 %vm1162_vm0, %v1161_v1 }
  0x21   : > { %1101 = vmatprep.subr.bf16.mxu0 %v1161_v1 }
  0x27   : > { %1092 = vmatmul.mubr.msk.bf16.vlgmr.msra.gmra.mrb[8].mxu0 %vm283_vm2, %v501_v21 }
  0x28   : > { %1103 = vmatprep.mubr.msk.bf16.mxu0 %vm1162_vm0, %v1161_v1  ;;  %1102 = vmatpush3.bf16.msra.mxu0 %v1148_v22 }
  0x29   : > { %1113 = vmatprep.subr.bf16.mxu0 %v1161_v1 }
  0xe7   : > { %v370_v24 = vpop.f32.mrb[0].mxu1 }
  0xe8   : > { %v1075_v25 = vpop.f32.mrb[1].mxu1 }
  0xe9   : > { %v373_v26 = vpop.f32.mrb[2].mxu1 }
  0xea   : > { %v321_v27 = vpop.f32.mrb[0].mxu0  ;;  %v1076_v28 = vpop.f32.mrb[3].mxu1 }
  0xeb   : > { %v371_v29 = vadd.f32 %v370_v24, %v321_v27  ;;  %v1069_v30 = vpop.f32.mrb[1].mxu0 }
  0xec   : > { %v324_v31 = vpop.f32.mrb[2].mxu0 }
  0xed   : > { %v374_v32 = vadd.f32 %v373_v26, %v324_v31  ;;  %v1070_v33 = vpop.f32.mrb[3].mxu0 }
  0xef   : > { %v486_v34 = vpop.f32.mrb[4].mxu1 }
  0xf0   : > { %v1087_v35 = vpop.f32.mrb[5].mxu1 }
  0xf1   : > { %v489_v36 = vpop.f32.mrb[6].mxu1 }
  0xf2   : > { %v427_v37 = vpop.f32.mrb[4].mxu0  ;;  %v1088_v38 = vpop.f32.mrb[7].mxu1 }
  0xf3   : > { %v434_v39 = vadd.f32 %v427_v37, %v371_v29  ;;  %v1081_v40 = vpop.f32.mrb[5].mxu0 }
  0xf4   : > { %v430_v41 = vpop.f32.mrb[6].mxu0 }
  0xf5   : > { %v435_v42 = vadd.f32 %v430_v41, %v374_v32  ;;  %v493_v43 = vadd.f32 %v486_v34, %v434_v39  ;;  %v1082_v44 = vpop.f32.mrb[7].mxu0 }
  0xf7   : > { %v494_v45 = vadd.f32 %v489_v36, %v435_v42  ;;  %v1034_v42 = vld [vmem:[%s1325_s4] ss:$0 sm:$0xff] }
  0xfa   : > { %v545_v46 = vpop.f32.mrb[8].mxu0 }
  0xfb   : > { %v552_v48 = vadd.f32 %v545_v46, %v493_v43  ;;  %v1093_v49 = vpop.f32.mrb[9].mxu0 }
  0xfc   : > { %v548_v50 = vpop.f32.mrb[10].mxu0 }
  0xfd   : > { %v561_v51 = vadd.f32 %v1013_v47, %v552_v48  ;;  %v553_v52 = vadd.f32 %v548_v50, %v494_v45  ;;  %v1094_v53 = vpop.f32.mrb[11].mxu0 }
  0xff   : > { %v562_v54 = vadd.f32 %v1013_v47, %v553_v52  ;;  %v563_v55 = vmax.f32 %v561_v51, 0.0 }
 0x101   : > { %v564_v56 = vmax.f32 %v562_v54, 0.0 }
 0x103   : > { %v565_v57 = vpack.c.bf16 %v564_v56, %v563_v55 }
 0x105   : > { %v567_v58 = vrot.slane %v565_v57, 6 }
 0x107   : > { %v570_v60 = vsel %vm261_vm1, %v567_v58, 0  ;;  %v569_v61 = vsel %vm261_vm1, 0, %v567_v58 }
 0x108   : > { %1104 = vmatmul.mubr.msk.bf16.vlgmr.msra.gmra.mrb[12].mxu0 %vm283_vm2, %v569_v61  ;;  %v578_v62 = vrot.slane %v569_v61, 1  ;;  %v579_v63 = vrot.slane %v570_v60, 1  ;;  %v741_v4 = vrot.slane %v569_v61, 3  ;;  %v742_v5 = vrot.slane %v570_v60, 3 }
 0x109   : > { %1114 = vmatpush3.bf16.msra.mxu0 %v1150_v59  ;;  %1115 = vmatprep.mubr.msk.bf16.mxu0 %vm1162_vm0, %v1161_v1  ;;  %v683_v7 = vrot.slane %v569_v61, 2  ;;  %v684_v8 = vrot.slane %v570_v60, 2  ;;  %v799_v12 = vrot.slane %v569_v61, 4  ;;  %v800_v13 = vrot.slane %v570_v60, 4 }
 0x10a   : > { %v580_v2 = vsel %vm273_vm3, %v578_v62, %v579_v63  ;;  %1125 = vmatprep.subr.bf16.mxu0 %v1161_v1  ;;  %v743_v9 = vsel %vm439_vm4, %v741_v4, %v742_v5 }
 0x10b   : > { %1098 = vmatmul.mubr.msk.bf16.vlgmr.msra.gmra.mrb[8].mxu1 %vm283_vm2, %v580_v2  ;;  %v685_v11 = vsel %vm380_vm5, %v683_v7, %v684_v8  ;;  %v801_v14 = vsel %vm498_vm6, %v799_v12, %v800_v13 }
 0x10c   : > { %1108 = vmatpush3.bf16.msra.mxu1 %v1149_v0  ;;  %1109 = vmatprep.mubr.msk.bf16.mxu1 %vm1162_vm0, %v1161_v1 }
 0x10d   : > { %1119 = vmatprep.subr.bf16.mxu1 %v1161_v1 }
 0x110   : > { %1116 = vmatmul.mubr.msk.bf16.vlgmr.msra.gmra.mrb[16].mxu0 %vm283_vm2, %v743_v9 }
 0x111   : > { %1126 = vmatpush3.bf16.msra.mxu0 %v1152_v6  ;;  %1127 = vmatprep.mubr.msk.bf16.mxu0 %vm1162_vm0, %v1161_v1 }
 0x113   : > { %1110 = vmatmul.mubr.msk.bf16.vlgmr.msra.gmra.mrb[12].mxu1 %vm283_vm2, %v685_v11 }
 0x114   : > { %1120 = vmatpush3.bf16.msra.mxu1 %v1151_v10  ;;  %1121 = vmatprep.mubr.msk.bf16.mxu1 %vm1162_vm0, %v1161_v1 }
 0x118   : > { %1128 = vmatmul.mubr.msk.bf16.vlgmr.msra.gmra.mrb[20].mxu0 %vm283_vm2, %v1228_v3 }
 0x11b   : > { %1122 = vmatmul.mubr.msk.bf16.vlgmr.msra.gmra.mrb[16].mxu1 %vm283_vm2, %v801_v14 }
 0x1db   : > { %v673_v15 = vpop.f32.mrb[12].mxu0 }
 0x1dc   : > { %v1105_v16 = vpop.f32.mrb[13].mxu0 }
 0x1dd   : > { %v676_v17 = vpop.f32.mrb[14].mxu0 }
 0x1de   : > { %v624_v18 = vpop.f32.mrb[8].mxu1  ;;  %v1106_v19 = vpop.f32.mrb[15].mxu0 }
 0x1df   : > { %v674_v20 = vadd.f32 %v673_v15, %v624_v18  ;;  %v1099_v21 = vpop.f32.mrb[9].mxu1 }
 0x1e0   : > { %v627_v22 = vpop.f32.mrb[10].mxu1 }
 0x1e1   : > { %v677_v23 = vadd.f32 %v676_v17, %v627_v22  ;;  %v1100_v24 = vpop.f32.mrb[11].mxu1 }
 0x1e3   : > { %v787_v1 = vpop.f32.mrb[16].mxu0 }
 0x1e4   : > { %v1117_v25 = vpop.f32.mrb[17].mxu0 }
 0x1e5   : > { %v790_v26 = vpop.f32.mrb[18].mxu0 }
 0x1e6   : > { %v729_v27 = vpop.f32.mrb[12].mxu1  ;;  %v1118_v28 = vpop.f32.mrb[19].mxu0 }
 0x1e7   : > { %v736_v3 = vadd.f32 %v729_v27, %v674_v20  ;;  %v1111_v29 = vpop.f32.mrb[13].mxu1 }
 0x1e8   : > { %v732_v30 = vpop.f32.mrb[14].mxu1 }
 0x1e9   : > { %v737_v31 = vadd.f32 %v732_v30, %v677_v23  ;;  %v1112_v32 = vpop.f32.mrb[15].mxu1  ;;  %v794_v33 = vadd.f32 %v787_v1, %v736_v3 }
 0x1eb   : > { %v899_v34 = vpop.f32.mrb[20].mxu0  ;;  %v795_v35 = vadd.f32 %v790_v26, %v737_v31 }
 0x1ec   : > { %v1129_v36 = vpop.f32.mrb[21].mxu0 }
 0x1ed   : > { %v902_v37 = vpop.f32.mrb[22].mxu0 }
 0x1ee   : > { %v845_v38 = vpop.f32.mrb[16].mxu1  ;;  %v1130_v39 = vpop.f32.mrb[23].mxu0 }
 0x1ef   : > { %v852_v40 = vadd.f32 %v845_v38, %v794_v33  ;;  %v1123_v41 = vpop.f32.mrb[17].mxu1 }
 0x1f0   : > { %v848_v43 = vpop.f32.mrb[18].mxu1 }
 0x1f1   : > { %v906_v44 = vadd.f32 %v899_v34, %v852_v40  ;;  %v853_v45 = vadd.f32 %v848_v43, %v795_v35  ;;  %v1124_v46 = vpop.f32.mrb[19].mxu1 }
 0x1f3   : > { %v915_v47 = vadd.f32 %v1034_v42, %v906_v44  ;;  %v907_v48 = vadd.f32 %v902_v37, %v853_v45 }
 0x1f5   : > { %v917_v49 = vmax.f32 %v915_v47, 0.0  ;;  %v916_v50 = vadd.f32 %v1034_v42, %v907_v48 }
 0x1f7   : > { %v1041_v51 = vpack.c.bf16 %v917_v49, %v917_v49  ;;  %v918_v52 = vmax.f32 %v916_v50, 0.0 }
 0x1f9   : > { %928 = vst.msk [vmem:[%s251_s10] sm:$0xf] %vm927_vm7, %v1041_v51  ;;  %v1042_v53 = vpack.c.bf16 %v918_v52, %v918_v52 }
 0x1fb   : > { %929 = vst.msk [vmem:[%s251_s10 + $0x4] sm:$0xf] %vm927_vm7, %v1042_v53 }
 0x1fc PF: > { %s16_s21 = sadd.s32 1, %s1159_s21  }
 0x1fd   : > { %p13_p4 = scmp.ge.s32.totalorder %s16_s21, 4  }
 0x1ff   :  { %15 = sbr.rel (!%p13_p4) target bundleno = 1 (0x1), region = 82 }

// kernel: _lambda_.2
= control target key start
LH: loop header
LB: loop body
LE: loop exit
PB: predicated region body
PF: predicated region fallthrough
CT: control target
= control target key end

     0   :  { %s1181_s21 = smov 0   ;;  %s1307_s0 = inlined_call_operand.vmem [shape: f32[2,16,8], index: 0, kind: input, shape index: {}]   ;;  %s1308_s1 = inlined_call_operand.vmem [shape: bf16[5,8,16], index: 1, kind: input, shape index: {}]   ;;  %s1309_s2 = inlined_call_operand.vmem [shape: f32[1,16], index: 2, kind: input, shape index: {}]   ;;  %s1310_s3 = inlined_call_operand.vmem [shape: bf16[5,16,16], index: 3, kind: input, shape index: {}]   ;;  %s1311_s4 = inlined_call_operand.vmem [shape: f32[1,16], index: 4, kind: input, shape index: {}]   ;;  %s1312_s5 = inlined_call_operand.vmem [shape: bf16[8,16], index: 5, kind: input, shape index: {}]   ;;  %s1313_s6 = inlined_call_operand.vmem [shape: bf16[2,16,16], index: 6, kind: output, shape index: {}]  }
   0x1 LB: > { %s986_s22 = sadd.s32 4294967295, %s1142_s21   ;;  %p990_p0 = scmp.ge.s32.totalorder %s1142_s21, 1  ;;  %s1142_s21 = sphi %s1181_s21, %s16_s21  }
   0x2   : > { %p212_p1 = scmp.lt.s32.totalorder %s1142_s21, 3 }
   0x4   : > { %p213_p2 = pnand %p990_p0, %p212_p1 }
   0x5   : > { %v995_v0 = vld [vmem:[%s1308_s1 + $0x4] sm:$0xf] (!%p213_p2)  ;;  %vm281_vm0 = vcmask (!%p213_p2), 1043456   ;;  %v263_v1 = vld [vmem:[%s1308_s1] sm:$0xf] (!%p213_p2)  ;;  %v1144_v2 = vmov (!%p213_p2), 0.0  }
   0x6   : > { %216 = sbr.rel (%p213_p2) target bundleno = 518 (0x206), region = 44  ;;  %1055 = vmatprep.subr.bf16.mxu0 (!%p213_p2), %v1144_v2  ;;  %v283_v3 = vsel (!%p213_p2), %vm281_vm0, %v995_v0, 0  ;;  %1061 = vmatprep.subr.bf16.mxu1 (!%p213_p2), %v1144_v2  ;;  %v329_v4 = vsel (!%p213_p2), %vm281_vm0, %v263_v1, 0  ;;  %p242_p3 = scmp.lt.s32.totalorder (!%p213_p2), %s986_s22, 1  ;;  %vm1145_vm1 = vmmov (!%p213_p2), 0   ;;  %vm258_vm2 = vcmask (!%p213_p2), 1040384  }
   0x7   : > { %1056 = vmatpush3.bf16.msra.mxu0 (!%p213_p2), %v283_v3  ;;  %1062 = vmatpush3.bf16.msra.mxu1 (!%p213_p2), %v329_v4  ;;  %v1000_v5 = vld [vmem:[%s1308_s1 + $0xc] sm:$0xf] (!%p213_p2)  ;;  %vm277_vm3 = vcmask (!%p213_p2), 64512   ;;  %v998_v21 = vld [vmem:[%s1308_s1 + $0x8] sm:$0xf] (!%p213_p2)  ;;  %vm376_vm6 = vcmask (!%p213_p2), 1046528  }
   0x8   : > { %1057 = vmatprep.mubr.msk.bf16.mxu0 (!%p213_p2), %vm1145_vm1, %v1144_v2  ;;  %1063 = vmatprep.mubr.msk.bf16.mxu1 (!%p213_p2), %vm1145_vm1, %v1144_v2  ;;  %v445_v10 = vsel (!%p213_p2), %vm281_vm0, %v1000_v5, 0  ;;  %vm266_vm4 = vsmask.f32 (!%p213_p2), 7424  ;;  %vm431_vm5 = vsmask.f32 (!%p213_p2), 6400  ;;  %v384_v25 = vsel (!%p213_p2), %vm281_vm0, %v998_v21, 0 }
   0x9   : > { %1067 = vmatprep.subr.bf16.mxu0 (!%p213_p2), %v1144_v2  ;;  %1073 = vmatprep.subr.bf16.mxu1 (!%p213_p2), %v1144_v2  ;;  %v1002_v32 = vld [vmem:[%s1308_s1 + $0x10] sm:$0xf] (!%p213_p2)  ;;  %vm492_vm7 = vcmask (!%p213_p2), 1045504   ;;  %v1131_v38 = vld [vmem:[%s1310_s3] sm:$0xff] (!%p213_p2)   ;;  %v1132_v39 = vld [vmem:[%s1310_s3 + $0x8] sm:$0xff] (!%p213_p2)   ;;  %vm583_vm8 = vcmask (!%p213_p2), 130048  }
   0xa   : > { %v500_v34 = vsel (!%p213_p2), %vm281_vm0, %v1002_v32, 0  ;;  %v1004_v63 = vld [vmem:[%s1309_s2] ss:$0 sm:$0xff] (!%p213_p2)  ;;  %vm928_vm9 = vcmask (!%p213_p2), 125952  }
   0xd   : > { %s1315_s22 = smov (!%p242_p3, %s986_s22), 1 }
   0xe   : > { %s1029_s27 = sshll.u32 %s1315_s22, 4  ;;  %s1030_s7 = sshll.u32 %s1315_s22, 3 }
   0xf   : > { %s246_s30 = scalar_lea.vmem %s1307_s0, %s1029_s27  ;;  %s251_s10 = scalar_lea.vmem %s1313_s6, %s1030_s7 }
  0x10   : > { %v253_v6 = vld [vmem:[%s246_s30] sm:$0xff]  ;;  %v254_v7 = vld [vmem:[%s246_s30 + $0x8] sm:$0xff] }
  0x11   : > { %v1214_v8 = vpack.c.bf16 %v254_v7, %v253_v6 }
  0x13   : > { %v257_v9 = vrot.slane %v1214_v8, 7 }
  0x15   : > { %v261_v11 = vsel %vm258_vm2, 0, %v257_v9  ;;  %v262_v12 = vsel %vm258_vm2, %v257_v9, 0 }
  0x16   : > { %v267_v13 = vshrl.u32 %v261_v11, 16  ;;  %v269_v14 = vshll.u32 %v261_v11, 16  ;;  %v273_v15 = vshll.u32 %v262_v12, 16  ;;  %1064 = vmatmul.mubr.msk.bf16.vlgmr.msra.gmra.mrb[0].mxu1 %vm277_vm3, %v261_v11  ;;  %v435_v16 = vshrl.u32 %v262_v12, 16 }
  0x17   : > { %1074 = vmatpush3.bf16.msra.mxu1 %v445_v10  ;;  %1075 = vmatprep.mubr.msk.bf16.mxu1 %vm1145_vm1, %v1144_v2  ;;  %v377_v30 = vrot.slane %v261_v11, 1  ;;  %v378_v31 = vrot.slane %v262_v12, 1  ;;  %v493_v35 = vrot.slane %v261_v11, 2  ;;  %v494_v36 = vrot.slane %v262_v12, 2 }
  0x18   : > { %v271_v17 = vrot.slane %v269_v14, 1  ;;  %v275_v18 = vrot.slane %v273_v15, 1  ;;  %v432_v19 = vrot.slane %v267_v13, 1  ;;  %v438_v20 = vrot.slane %v273_v15, 2  ;;  %1085 = vmatprep.subr.bf16.mxu1 %v1144_v2 }
  0x19   : > { %v433_v22 = vrot.slane %v269_v14, 2  ;;  %v437_v23 = vrot.slane %v435_v16, 1  ;;  %v379_v33 = vsel %vm376_vm6, %v377_v30, %v378_v31  ;;  %v495_v37 = vsel %vm492_vm7, %v493_v35, %v494_v36  ;;  %v1135_v36 = vld [vmem:[%s1310_s3 + $0x20] sm:$0xff]  }
  0x1a   : > { %v272_v24 = vor.u32 %v271_v17, %v267_v13  ;;  %v1133_v13 = vld [vmem:[%s1310_s3 + $0x18] sm:$0xff]  }
  0x1b   : > { %v434_v26 = vor.u32 %v433_v22, %v432_v19  ;;  %v439_v27 = vor.u32 %v438_v20, %v437_v23 }
  0x1c   : > { %v276_v28 = vsel %vm266_vm4, %v272_v24, %v275_v18 }
  0x1d   : > { %1058 = vmatmul.mubr.msk.bf16.vlgmr.msra.gmra.mrb[0].mxu0 %vm277_vm3, %v276_v28  ;;  %v440_v29 = vsel %vm431_vm5, %v434_v26, %v439_v27  ;;  %v1134_v27 = vld [vmem:[%s1310_s3 + $0x10] sm:$0xff]   ;;  %v859_v28 = vld [vmem:[%s1312_s5] sm:$0xf] }
  0x1e   : > { %1068 = vmatpush3.bf16.msra.mxu0 %v384_v25  ;;  %1069 = vmatprep.mubr.msk.bf16.mxu0 %vm1145_vm1, %v1144_v2 }
  0x1f   : > { %1079 = vmatprep.subr.bf16.mxu0 %v1144_v2  ;;  %1076 = vmatmul.mubr.msk.bf16.vlgmr.msra.gmra.mrb[4].mxu1 %vm277_vm3, %v440_v29 }
  0x20   : > { %1087 = vmatprep.mubr.msk.bf16.mxu1 %vm1145_vm1, %v1144_v2  ;;  %1086 = vmatpush3.bf16.msra.mxu1 %v1132_v39 }
  0x21   : > { %1097 = vmatprep.subr.bf16.mxu1 %v1144_v2 }
  0x25   : > { %1070 = vmatmul.mubr.msk.bf16.vlgmr.msra.gmra.mrb[4].mxu0 %vm277_vm3, %v379_v33  ;;  %v864_v33 = vsel %vm281_vm0, %v859_v28, 0 }
  0x26   : > { %1080 = vmatpush3.bf16.msra.mxu0 %v500_v34  ;;  %1081 = vmatprep.mubr.msk.bf16.mxu0 %vm1145_vm1, %v1144_v2 }
  0x27   : > { %1091 = vmatprep.subr.bf16.mxu0 %v1144_v2 }
  0x2d   : > { %1082 = vmatmul.mubr.msk.bf16.vlgmr.msra.gmra.mrb[8].mxu0 %vm277_vm3, %v495_v37 }
  0x2e   : > { %1093 = vmatprep.mubr.msk.bf16.mxu0 %vm1145_vm1, %v1144_v2  ;;  %1092 = vmatpush3.bf16.msra.mxu0 %v1131_v38 }
  0x2f   : > { %1103 = vmatprep.subr.bf16.mxu0 %v1144_v2 }
  0xe9   : > { %v365_v40 = vpop.f32.mrb[0].mxu1 }
  0xea   : > { %v1065_v41 = vpop.f32.mrb[1].mxu1 }
  0xeb   : > { %v368_v42 = vpop.f32.mrb[2].mxu1 }
  0xec   : > { %v1066_v43 = vpop.f32.mrb[3].mxu1 }
  0xf0   : > { %v319_v44 = vpop.f32.mrb[0].mxu0 }
  0xf1   : > { %v366_v45 = vadd.f32 %v365_v40, %v319_v44  ;;  %v1059_v46 = vpop.f32.mrb[1].mxu0 }
  0xf2   : > { %v322_v47 = vpop.f32.mrb[2].mxu0  ;;  %v481_v48 = vpop.f32.mrb[4].mxu1 }
  0xf3   : > { %v369_v49 = vadd.f32 %v368_v42, %v322_v47  ;;  %v1060_v50 = vpop.f32.mrb[3].mxu0  ;;  %v1077_v51 = vpop.f32.mrb[5].mxu1 }
  0xf4   : > { %v484_v52 = vpop.f32.mrb[6].mxu1 }
  0xf5   : > { %v1078_v53 = vpop.f32.mrb[7].mxu1 }
  0xf8   : > { %v420_v54 = vpop.f32.mrb[4].mxu0 }
  0xf9   : > { %v427_v55 = vadd.f32 %v420_v54, %v366_v45  ;;  %v1071_v56 = vpop.f32.mrb[5].mxu0 }
  0xfa   : > { %v423_v57 = vpop.f32.mrb[6].mxu0 }
  0xfb   : > { %v428_v58 = vadd.f32 %v423_v57, %v369_v49  ;;  %v488_v59 = vadd.f32 %v481_v48, %v427_v55  ;;  %v1072_v60 = vpop.f32.mrb[7].mxu0 }
  0xfd   : > { %v489_v61 = vadd.f32 %v484_v52, %v428_v58 }
 0x100   : > { %v536_v62 = vpop.f32.mrb[8].mxu0 }
 0x101   : > { %v543_v0 = vadd.f32 %v536_v62, %v488_v59  ;;  %v1083_v1 = vpop.f32.mrb[9].mxu0 }
 0x102   : > { %v539_v3 = vpop.f32.mrb[10].mxu0 }
 0x103   : > { %v552_v4 = vadd.f32 %v1004_v63, %v543_v0  ;;  %v544_v5 = vadd.f32 %v539_v3, %v489_v61  ;;  %v1084_v6 = vpop.f32.mrb[11].mxu0 }
 0x105   : > { %v553_v7 = vadd.f32 %v1004_v63, %v544_v5  ;;  %v554_v9 = vmax.f32 %v552_v4, 0.0  ;;  %v1024_v5 = vld [vmem:[%s1311_s4] ss:$0 sm:$0xff] }
 0x107   : > { %v555_v10 = vmax.f32 %v553_v7, 0.0 }
 0x109   : > { %v556_v11 = vpack.c.bf16 %v555_v10, %v554_v9 }
 0x10b   : > { %v558_v12 = vrot.slane %v556_v11, 7 }
 0x10d   : > { %v561_v14 = vsel %vm258_vm2, %v558_v12, 0  ;;  %v560_v15 = vsel %vm258_vm2, 0, %v558_v12 }
 0x10e   : > { %v573_v16 = vshll.u32 %v561_v14, 16  ;;  %v743_v17 = vshrl.u32 %v561_v14, 16  ;;  %v567_v18 = vshrl.u32 %v560_v15, 16  ;;  %v569_v19 = vshll.u32 %v560_v15, 16  ;;  %1094 = vmatmul.mubr.msk.bf16.vlgmr.msra.gmra.mrb[12].mxu0 %vm583_vm8, %v560_v15 }
 0x10f   : > { %1104 = vmatpush3.bf16.msra.mxu0 %v1133_v13  ;;  %1105 = vmatprep.mubr.msk.bf16.mxu0 %vm1145_vm1, %v1144_v2  ;;  %v682_v34 = vrot.slane %v560_v15, 1  ;;  %v683_v35 = vrot.slane %v561_v14, 1  ;;  %v804_v38 = vrot.slane %v560_v15, 2  ;;  %v805_v39 = vrot.slane %v561_v14, 2 }
 0x110   : > { %v745_v20 = vrot.slane %v743_v17, 1  ;;  %v571_v21 = vrot.slane %v569_v19, 1  ;;  %v740_v22 = vrot.slane %v567_v18, 1  ;;  %1115 = vmatprep.subr.bf16.mxu0 %v1144_v2  ;;  %v741_v23 = vrot.slane %v569_v19, 2 }
 0x111   : > { %v746_v24 = vrot.slane %v573_v16, 2  ;;  %v575_v26 = vrot.slane %v573_v16, 1  ;;  %v684_v37 = vsel %vm376_vm6, %v682_v34, %v683_v35  ;;  %v806_v40 = vsel %vm492_vm7, %v804_v38, %v805_v39 }
 0x112   : > { %v572_v25 = vor.u32 %v571_v21, %v567_v18  ;;  %v742_v29 = vor.u32 %v741_v23, %v740_v22 }
 0x113   : > { %v747_v30 = vor.u32 %v746_v24, %v745_v20 }
 0x114   : > { %v576_v31 = vsel %vm266_vm4, %v572_v25, %v575_v26 }
 0x115   : > { %1088 = vmatmul.mubr.msk.bf16.vlgmr.msra.gmra.mrb[8].mxu1 %vm583_vm8, %v576_v31  ;;  %v748_v32 = vsel %vm431_vm5, %v742_v29, %v747_v30 }
 0x116   : > { %1098 = vmatpush3.bf16.msra.mxu1 %v1134_v27  ;;  %1106 = vmatmul.mubr.msk.bf16.vlgmr.msra.gmra.mrb[16].mxu0 %vm583_vm8, %v748_v32 }
 0x117   : > { %1099 = vmatprep.mubr.msk.bf16.mxu1 %vm1145_vm1, %v1144_v2  ;;  %1109 = vmatprep.subr.bf16.mxu1 %v1144_v2 }
 0x118   : > { %1116 = vmatpush3.bf16.msra.mxu0 %v864_v33  ;;  %1117 = vmatprep.mubr.msk.bf16.mxu0 %vm1145_vm1, %v1144_v2 }
 0x11d   : > { %1100 = vmatmul.mubr.msk.bf16.vlgmr.msra.gmra.mrb[12].mxu1 %vm583_vm8, %v684_v37 }
 0x11e   : > { %1110 = vmatpush3.bf16.msra.mxu1 %v1135_v36  ;;  %1111 = vmatprep.mubr.msk.bf16.mxu1 %vm1145_vm1, %v1144_v2 }
 0x11f   : > { %1118 = vmatmul.mubr.msk.bf16.vlgmr.msra.gmra.mrb[20].mxu0 %vm277_vm3, %v1214_v8 }
 0x125   : > { %1112 = vmatmul.mubr.msk.bf16.vlgmr.msra.gmra.mrb[16].mxu1 %vm583_vm8, %v806_v40 }
 0x1e1   : > { %v670_v41 = vpop.f32.mrb[12].mxu0 }
 0x1e2   : > { %v1095_v42 = vpop.f32.mrb[13].mxu0 }
 0x1e3   : > { %v673_v43 = vpop.f32.mrb[14].mxu0 }
 0x1e4   : > { %v1096_v44 = vpop.f32.mrb[15].mxu0 }
 0x1e8   : > { %v621_v45 = vpop.f32.mrb[8].mxu1 }
 0x1e9   : > { %v671_v46 = vadd.f32 %v670_v41, %v621_v45  ;;  %v1089_v47 = vpop.f32.mrb[9].mxu1  ;;  %v792_v48 = vpop.f32.mrb[16].mxu0 }
 0x1ea   : > { %v624_v49 = vpop.f32.mrb[10].mxu1  ;;  %v1107_v50 = vpop.f32.mrb[17].mxu0 }
 0x1eb   : > { %v674_v2 = vadd.f32 %v673_v43, %v624_v49  ;;  %v1090_v51 = vpop.f32.mrb[11].mxu1  ;;  %v795_v52 = vpop.f32.mrb[18].mxu0 }
 0x1ec   : > { %v1108_v8 = vpop.f32.mrb[19].mxu0 }
 0x1f0   : > { %v728_v53 = vpop.f32.mrb[12].mxu1 }
 0x1f1   : > { %v735_v54 = vadd.f32 %v728_v53, %v671_v46  ;;  %v1101_v55 = vpop.f32.mrb[13].mxu1 }
 0x1f2   : > { %v731_v56 = vpop.f32.mrb[14].mxu1  ;;  %v900_v57 = vpop.f32.mrb[20].mxu0 }
 0x1f3   : > { %v736_v58 = vadd.f32 %v731_v56, %v674_v2  ;;  %v1102_v59 = vpop.f32.mrb[15].mxu1  ;;  %v799_v60 = vadd.f32 %v792_v48, %v735_v54  ;;  %v1119_v61 = vpop.f32.mrb[21].mxu0 }
 0x1f4   : > { %v903_v62 = vpop.f32.mrb[22].mxu0 }
 0x1f5   : > { %v800_v63 = vadd.f32 %v795_v52, %v736_v58  ;;  %v1120_v0 = vpop.f32.mrb[23].mxu0 }
 0x1f8   : > { %v850_v1 = vpop.f32.mrb[16].mxu1 }
 0x1f9   : > { %v857_v3 = vadd.f32 %v850_v1, %v799_v60  ;;  %v1113_v4 = vpop.f32.mrb[17].mxu1 }
 0x1fa   : > { %v853_v6 = vpop.f32.mrb[18].mxu1 }
 0x1fb   : > { %v907_v7 = vadd.f32 %v900_v57, %v857_v3  ;;  %v858_v9 = vadd.f32 %v853_v6, %v800_v63  ;;  %v1114_v10 = vpop.f32.mrb[19].mxu1 }
 0x1fd   : > { %v916_v11 = vadd.f32 %v1024_v5, %v907_v7  ;;  %v908_v12 = vadd.f32 %v903_v62, %v858_v9 }
 0x1ff   : > { %v918_v13 = vmax.f32 %v916_v11, 0.0  ;;  %v917_v14 = vadd.f32 %v1024_v5, %v908_v12 }
 0x201   : > { %v1031_v15 = vpack.c.bf16 %v918_v13, %v918_v13  ;;  %v919_v16 = vmax.f32 %v917_v14, 0.0 }
 0x203   : > { %929 = vst.msk [vmem:[%s251_s10] sm:$0xf] %vm928_vm9, %v1031_v15  ;;  %v1032_v17 = vpack.c.bf16 %v919_v16, %v919_v16 }
 0x205   : > { %930 = vst.msk [vmem:[%s251_s10 + $0x4] sm:$0xf] %vm928_vm9, %v1032_v17 }
 0x206 PF: > { %s16_s21 = sadd.s32 1, %s1142_s21  }
 0x207   : > { %p13_p4 = scmp.ge.s32.totalorder %s16_s21, 4  }
 0x209   :  { %15 = sbr.rel (!%p13_p4) target bundleno = 1 (0x1), region = 82 }

</bundles_post_ra>
